<compile_context>
chip_gen: v7x
topology: tpu7x:2x2x1
jax: 0.10.0
libtpu: 0.0.40
codegen_flags: <defaults>
</compile_context>

<pallas_src>
import functools

import jax
import jax.numpy as jnp
from jax.experimental import pallas as pl
from jax.experimental.pallas import tpu as pltpu

_INV_SQRT_2 = 0.7071067811865476


def _gelu_exact_f32(x):
    # torch.nn.GELU() default (approximate='none') == exact erf-based GELU.
    # Constant multiply instead of divide (single VALU op).
    return 0.5 * x * (1.0 + jax.lax.erf(x * _INV_SQRT_2))


def _epilogue(gate_acc, val_acc, out_dtype, approx_gelu):
    if approx_gelu:
        gate = jax.nn.gelu(gate_acc, approximate=True)   # tanh path -> EUP slot
    else:
        gate = _gelu_exact_f32(gate_acc)
    return (gate * val_acc).astype(out_dtype)


def _gated_act_kernel_single_k(x_ref, w0_ref, w1_ref, o_ref, *, approx_gelu):
    """Whole hidden dim in one block: no scratch accumulators, write directly."""
    x = x_ref[...]
    g = jnp.dot(x, w0_ref[...], preferred_element_type=jnp.float32)
    v = jnp.dot(x, w1_ref[...], preferred_element_type=jnp.float32)
    o_ref[...] = _epilogue(g, v, o_ref.dtype, approx_gelu)


def _gated_act_kernel_multi_k(x_ref, w0_ref, w1_ref, o_ref, acc0_ref, acc1_ref,
                              *, approx_gelu):
    """One (tm, tn) output tile; grid axis 2 runs the K (hidden) reduction."""
    k = pl.program_id(2)
    x = x_ref[...]
    g = jnp.dot(x, w0_ref[...], preferred_element_type=jnp.float32)
    v = jnp.dot(x, w1_ref[...], preferred_element_type=jnp.float32)

    @pl.when(k == 0)
    def _():                         # first step: plain write (skip zero-init RMW)
        acc0_ref[...] = g
        acc1_ref[...] = v

    @pl.when(k > 0)
    def _():
        acc0_ref[...] += g
        acc1_ref[...] += v

    @pl.when(k == pl.num_programs(2) - 1)
    def _():
        o_ref[...] = _epilogue(acc0_ref[...], acc1_ref[...], o_ref.dtype, approx_gelu)


# ----------------------------------------------------------------------------
# Tile selection helpers
# ----------------------------------------------------------------------------
def _round_up(x, m):
    return ((x + m - 1) // m) * m


def _divisor_tile(dim, pref, step, min_tile):
    """Largest multiple of `step` in [min_tile, pref] dividing `dim`, else full extent."""
    if dim <= pref:
        return dim
    t = (pref // step) * step
    while t >= min_tile:
        if dim % t == 0:
            return t
        t -= step
    return dim


def _shrink_divisor_tile(dim, cur, step, floor):
    """Next smaller legal tile (divisor of dim, multiple of step), or `cur` if none."""
    t = min(cur, dim) - step
    while t >= floor:
        if dim % t == 0:
            return t
        t -= step
    return cur


@functools.lru_cache(maxsize=None)
def _tpu_vmem_bytes():
    try:
        return int(pltpu.get_tpu_info().vmem_capacity_bytes)
    except Exception:
        pass
    try:
        kind = jax.devices()[0].device_kind.lower()
        if "v7" in kind:
            return 64 << 20
    except Exception:
        pass
    return 128 << 20                       # v5e / v6e


def _choose_tiles(M, H, I, in_isz, out_isz):
    """Chip-aware tiles: go big on 128 MiB VMEM chips, cap working set on v7x."""
    vmem = _tpu_vmem_bytes()
    big_vmem = vmem >= (100 << 20)
    budget = (56 << 20) if big_vmem else (26 << 20)
    m_step = 8 * max(1, 4 // in_isz)       # sublane packing: f32->8, bf16->16, i8->32

    tm = min(1024 if big_vmem else 512, _round_up(M, m_step))
    tn = _divisor_tile(I, 2048 if big_vmem else 1024, 128, 128)
    tk = _divisor_tile(H, 2048, 128, 128)

    def ws(tm_, tn_, tk_):
        # double-buffered x / w0 / w1 / out tiles + two f32 accumulators
        return (2 * tm_ * tk_ * in_isz + 4 * tk_ * tn_ * in_isz
                + 2 * tm_ * tn_ * out_isz + 2 * tm_ * tn_ * 4)

    # Greedy shrink: K-tile first (does not change HBM traffic), then N, then M.
    for _ in range(64):
        if ws(tm, tn, tk) <= budget:
            break
        if tk > 256:
            new = _shrink_divisor_tile(H, tk, 128, 256)
            if new < tk:
                tk = new
                continue
        if tn > 256:
            new = _shrink_divisor_tile(I, tn, 128, 256)
            if new < tn:
                tn = new
                continue
        if tm > m_step:
            tm = max(m_step, _round_up(tm // 2, m_step))
            continue
        break

    # v7x has 2 TensorCores: if the parallel grid collapsed to one block, split
    # the output dim so both cores get work (harmless on 1-TC chips).
    if (_round_up(M, tm) // tm) * (I // tn) < 2:
        half = _divisor_tile(I, max(128, tn // 2), 128, 128)
        if 128 <= half < tn:
            tn = half

    vmem_limit = (96 << 20) if big_vmem else (48 << 20)
    return tm, tn, tk, vmem_limit


# ----------------------------------------------------------------------------
# Wrapper
# ----------------------------------------------------------------------------
@functools.partial(jax.jit,
                   static_argnames=("tm", "tn", "tk", "approx_gelu", "compute_dtype"))
def cpmant_dense_gated_act(hidden_states, w0, w1, *, tm=None, tn=None, tk=None,
                           approx_gelu=False, compute_dtype=None):
    """hidden_states: [B, S, H]; w0, w1: [H, I]  ->  [B, S, I] = gelu(x@w0) * (x@w1).

    `compute_dtype` (e.g. jnp.bfloat16) casts matmul operands for ~2x MXU
    throughput and half the HBM traffic (f32 accumulation either way).
    `approx_gelu=True` uses tanh-GELU (EUP path, cheaper on v5e) - numerics
    deviate slightly from torch's exact erf GELU, so it defaults to False.
    """
    B, S, H = hidden_states.shape
    Hw0, I = w0.shape
    assert Hw0 == H and w1.shape == (H, I), "weights must be [hidden_size, dim_ff]"

    M = B * S
    x2d = hidden_states.reshape(M, H)
    if compute_dtype is not None:
        cd = jnp.dtype(compute_dtype)
        x2d, w0, w1 = x2d.astype(cd), w0.astype(cd), w1.astype(cd)

    in_isz = x2d.dtype.itemsize
    out_dtype = x2d.dtype
    out_isz = jnp.dtype(out_dtype).itemsize

    a_tm, a_tn, a_tk, vmem_limit = _choose_tiles(M, H, I, in_isz, out_isz)
    tm = a_tm if tm is None else tm
    tn = a_tn if tn is None else tn
    tk = a_tk if tk is None else tk
    assert I % tn == 0 and H % tk == 0, "tn / tk must divide dim_ff / hidden_size"

    # Pad tokens to a tile multiple (bounded blocks, lane/sublane aligned).
    M_pad = _round_up(M, tm)
    if M_pad != M:
        x2d = jnp.pad(x2d, ((0, M_pad - M), (0, 0)))

    gi, gj, gk = M_pad // tm, I // tn, H // tk

    # HBM traffic with the actual re-read factors (advisory, for XLA scheduling).
    cost = pl.CostEstimate(
        flops=2 * 2 * M_pad * H * I,                     # two GEMMs
        transcendentals=M_pad * I,                       # one erf/tanh per output elem
        bytes_accessed=(M_pad * H * in_isz * gj          # x re-read per output-col block
                        + 2 * H * I * in_isz * gi        # w0+w1 re-read per token block
                        + M_pad * I * out_isz),          # output written once
    )
    compiler_params = pltpu.CompilerParams(
        dimension_semantics=("parallel", "parallel") + (("arbitrary",) if gk > 1 else ()),
        vmem_limit_bytes=vmem_limit,
    )

    if gk == 1:
        kernel = functools.partial(_gated_act_kernel_single_k, approx_gelu=approx_gelu)
        grid_spec = pltpu.PrefetchScalarGridSpec(
            num_scalar_prefetch=0,
            grid=(gi, gj),
            in_specs=[
                pl.BlockSpec((tm, tk), lambda i, j: (i, 0)),   # x tile (shared)
                pl.BlockSpec((tk, tn), lambda i, j: (0, j)),   # w0 tile
                pl.BlockSpec((tk, tn), lambda i, j: (0, j)),   # w1 tile
            ],
            out_specs=pl.BlockSpec((tm, tn), lambda i, j: (i, j)),
        )
    else:
        kernel = functools.partial(_gated_act_kernel_multi_k, approx_gelu=approx_gelu)
        grid_spec = pltpu.PrefetchScalarGridSpec(
            num_scalar_prefetch=0,
            grid=(gi, gj, gk),
            in_specs=[
                pl.BlockSpec((tm, tk), lambda i, j, k: (i, k)),   # x tile (shared)
                pl.BlockSpec((tk, tn), lambda i, j, k: (k, j)),   # w0 tile
                pl.BlockSpec((tk, tn), lambda i, j, k: (k, j)),   # w1 tile
            ],
            out_specs=pl.BlockSpec((tm, tn), lambda i, j, k: (i, j)),
            scratch_shapes=[
                pltpu.VMEM((tm, tn), jnp.float32),   # gate-projection accumulator
                pltpu.VMEM((tm, tn), jnp.float32),   # value-projection accumulator
            ],
        )

    out2d = pl.pallas_call(
        kernel,
        out_shape=jax.ShapeDtypeStruct((M_pad, I), out_dtype),
        grid_spec=grid_spec,
        compiler_params=compiler_params,
        cost_estimate=cost,
    )(x2d, w0, w1)

    if M_pad != M:
        out2d = out2d[:M]
    return out2d.reshape(B, S, I)


def _reference(hidden_states, w0, w1):
    hp = jax.lax.Precision.HIGHEST
    g = jnp.einsum("bsh,hi->bsi", hidden_states, w0, precision=hp)
    v = jnp.einsum("bsh,hi->bsi", hidden_states, w1, precision=hp)
    return _gelu_exact_f32(g) * v


if __name__ == "__main__":
    key = jax.random.PRNGKey(0)

    # ---- Test 1: small module-consistent shapes (single-block path).
    B, S, H, I = 2, 8, 32, 64
    k_x, k_w0, k_w1, key = jax.random.split(key, 4)
    hidden_states = jax.random.normal(k_x, (B, S, H), dtype=jnp.float32)
    # nn.Linear(hidden_size, dim_ff, bias=False): torch weight is [I, H]; store transposed [H, I].
    w0 = jax.random.normal(k_w0, (H, I), dtype=jnp.float32) * 0.02
    w1 = jax.random.normal(k_w1, (H, I), dtype=jnp.float32) * 0.02
    out = jax.block_until_ready(cpmant_dense_gated_act(hidden_states, w0, w1))
    ref = _reference(hidden_states, w0, w1)
    assert out.shape == (B, S, I)
    assert jnp.allclose(out, ref, atol=1e-5, rtol=1e-5), "small-shape mismatch vs reference"

    # ---- Test 2: larger shapes, ragged token count (exercises padding + big-tile path).
    B2, S2, H2, I2 = 2, 125, 1024, 1024          # M = 250 -> padded to a tile multiple
    k_x2, k_w02, k_w12, key = jax.random.split(key, 4)
    x2 = jax.random.normal(k_x2, (B2, S2, H2), dtype=jnp.float32)
    w02 = jax.random.normal(k_w02, (H2, I2), dtype=jnp.float32) * 0.02
    w12 = jax.random.normal(k_w12, (H2, I2), dtype=jnp.float32) * 0.02
    out2 = jax.block_until_ready(cpmant_dense_gated_act(x2, w02, w12))
    ref2 = _reference(x2, w02, w12)
    assert out2.shape == (B2, S2, I2)
    assert jnp.allclose(out2, ref2, atol=2e-2, rtol=2e-2), "tiled-path mismatch vs reference"

    # ---- Test 3: explicit small tiles -> exercises the K-reduction (multi-K) kernel.
    out3 = jax.block_until_ready(
        cpmant_dense_gated_act(x2, w02, w12, tm=128, tn=256, tk=256))
    assert jnp.allclose(out3, ref2, atol=2e-2, rtol=2e-2), "multi-K-path mismatch vs reference"

    # ---- Test 4: bf16 operands (f32 accumulation) -- the recommended prod config.
    out4 = jax.block_until_ready(
        cpmant_dense_gated_act(x2, w02, w12, compute_dtype=jnp.bfloat16))
    ref4 = _reference(x2.astype(jnp.bfloat16).astype(jnp.float32),
                      w02.astype(jnp.bfloat16).astype(jnp.float32),
                      w12.astype(jnp.bfloat16).astype(jnp.float32))
    assert out4.shape == (B2, S2, I2)
    assert jnp.allclose(out4.astype(jnp.float32), ref4, atol=1.5e-2, rtol=1.5e-2), \
        "bf16-path mismatch vs reference"

    print("KERNEL_OK")
</pallas_src>

<mosaic_0001>
module attributes {stable_mosaic.version = 11 : i64} {
  func.func @_gated_act_kernel_single_k(%arg0: i32, %arg1: i32, %arg2: memref<16x32xf32, #tpu.memory_space<vmem>>, %arg3: memref<32x64xf32, #tpu.memory_space<vmem>>, %arg4: memref<32x64xf32, #tpu.memory_space<vmem>>, %arg5: memref<16x64xf32, #tpu.memory_space<vmem>>) attributes {dimension_semantics = [#tpu.dimension_semantics<parallel>, #tpu.dimension_semantics<parallel>], iteration_bounds = array<i64: 1, 1>, scalar_prefetch = 0 : i64, scratch_operands = 0 : i64, tpu.core_type = #tpu.core_type<tc>, window_params = [{transform_indices = @transform_0, window_bounds = array<i64: 16, 32>}, {transform_indices = @transform_1, window_bounds = array<i64: 32, 64>}, {transform_indices = @transform_2, window_bounds = array<i64: 32, 64>}, {transform_indices = @transform_3, window_bounds = array<i64: 16, 64>}]} {
    %c0 = arith.constant 0 : index
    %c0_0 = arith.constant 0 : index
    %0 = vector.load %arg2[%c0, %c0_0] : memref<16x32xf32, #tpu.memory_space<vmem>>, vector<16x32xf32>
    %c0_1 = arith.constant 0 : index
    %c0_2 = arith.constant 0 : index
    %1 = vector.load %arg3[%c0_1, %c0_2] : memref<32x64xf32, #tpu.memory_space<vmem>>, vector<32x64xf32>
    %cst = arith.constant dense<0.000000e+00> : vector<16x64xf32>
    %2 = tpu.matmul %0, %1, %cst {dimension_numbers = #tpu.dot_dimension_numbers<[1], [0], [0], [1], [0, 0, 1, 1], [], []>} : vector<16x32xf32>, vector<32x64xf32>, vector<16x64xf32> -> vector<16x64xf32>
    %c0_3 = arith.constant 0 : index
    %c0_4 = arith.constant 0 : index
    %3 = vector.load %arg4[%c0_3, %c0_4] : memref<32x64xf32, #tpu.memory_space<vmem>>, vector<32x64xf32>
    %cst_5 = arith.constant dense<0.000000e+00> : vector<16x64xf32>
    %4 = tpu.matmul %0, %3, %cst_5 {dimension_numbers = #tpu.dot_dimension_numbers<[1], [0], [0], [1], [0, 0, 1, 1], [], []>} : vector<16x32xf32>, vector<32x64xf32>, vector<16x64xf32> -> vector<16x64xf32>
    %cst_6 = arith.constant 5.000000e-01 : f32
    %5 = vector.broadcast %cst_6 : f32 to vector<16x64xf32>
    %6 = arith.mulf %5, %2 : vector<16x64xf32>
    %cst_7 = arith.constant 0.707106769 : f32
    %7 = vector.broadcast %cst_7 : f32 to vector<16x64xf32>
    %8 = arith.mulf %2, %7 : vector<16x64xf32>
    %9 = math.erf %8 : vector<16x64xf32>
    %cst_8 = arith.constant 1.000000e+00 : f32
    %10 = vector.broadcast %cst_8 : f32 to vector<16x64xf32>
    %11 = arith.addf %10, %9 : vector<16x64xf32>
    %12 = arith.mulf %6, %11 : vector<16x64xf32>
    %13 = arith.mulf %12, %4 : vector<16x64xf32>
    %c0_9 = arith.constant 0 : index
    %c0_10 = arith.constant 0 : index
    %14 = vector.load %arg5[%c0_9, %c0_10] : memref<16x64xf32, #tpu.memory_space<vmem>>, vector<16x64xf32>
    tpu.vector_store %arg5[%c0_9, %c0_10], %13 {strides = array<i32>} : memref<16x64xf32, #tpu.memory_space<vmem>>, vector<16x64xf32>,
    return
  }
  func.func @transform_0(%arg0: i32, %arg1: i32) -> (i32, i32) {
    %c0_i32 = arith.constant 0 : i32
    %c0_i32_0 = arith.constant 0 : i32
    return %arg0, %c0_i32 : i32, i32
  }
  func.func @transform_1(%arg0: i32, %arg1: i32) -> (i32, i32) {
    %c0_i32 = arith.constant 0 : i32
    %c0_i32_0 = arith.constant 0 : i32
    return %c0_i32, %arg1 : i32, i32
  }
  func.func @transform_2(%arg0: i32, %arg1: i32) -> (i32, i32) {
    %c0_i32 = arith.constant 0 : i32
    %c0_i32_0 = arith.constant 0 : i32
    return %c0_i32, %arg1 : i32, i32
  }
  func.func @transform_3(%arg0: i32, %arg1: i32) -> (i32, i32) {
    %c0_i32 = arith.constant 0 : i32
    return %arg0, %arg1 : i32, i32
  }
}

</mosaic_0001>

<bundles_post_ra>
// kernel: cpmant_dense_gated_act.1
= control target key start
LH: loop header
LB: loop body
LE: loop exit
PB: predicated region body
PF: predicated region fallthrough
CT: control target
= control target key end

     0   :  { %8 = vsyncpa [#allocation3], 0  ;;  %s511_s0 = inlined_call_operand.hbm [shape: f32[16,32], index: 0, kind: input, shape index: {}]   ;;  %s512_s1 = inlined_call_operand.hbm [shape: f32[32,64], index: 1, kind: input, shape index: {}]   ;;  %s513_s2 = inlined_call_operand.hbm [shape: f32[32,64], index: 2, kind: input, shape index: {}]   ;;  %s514_s3 = inlined_call_operand.hbm [shape: f32[16,64], index: 3, kind: output, shape index: {}]  }
   0x1   :  { %9 = vsyncpa [#allocation6], 0 }
   0x2   :  { %10 = vsyncpa [#allocation4], 0  ;;  %s414_s12 = smov [#allocation5]   ;;  %s415_s14 = smov [#allocation2]  }
   0x3   :  { %s28_s13 = sshll.u32 %s414_s12, 4  ;;  %s16_s15 = sshll.u32 %s415_s14, 4  ;;  %s29_s13 = int_to_ptr.vmem [resolvable:$true] %s28_s13  ;;  %s440_s15 = int_to_ptr.vmem [resolvable:$true] %s16_s15 }
   0x4   :  { %s320_s18 = scalar_lea.hbm %s512_s1, 512 }
   0x5   :  { %p321_p0 = scmp.ne.s32.totalorder %s512_s1, %s320_s18  ;;  %p324_p1 = scmp.lt.u32.totalorder %s320_s18, %s512_s1 }
   0x7   :  { %p326_p2 = pnand %p324_p1, %p321_p0 }
   0x9   :  { %329 = shalt.err (!%p326_p2)
}
   0xa   :  { %s330_s23 = scalar_lea.vmem %s29_s13, 512  ;;  %p335_p4 = scmp.lt.s32.totalorder %s29_s13, %s29_s13 }
   0xb   :  { %p331_p3 = scmp.ne.s32.totalorder %s29_s13, %s330_s23  ;;  %p336_p5 = scmp.lt.s32.totalorder %s330_s23, %s330_s23 }
   0xd   :  { %p337_p6 = por %p336_p5, %p335_p4 }
   0xf   :  { %p338_p7 = pnand %p337_p6, %p331_p3 }
  0x11   :  { %341 = shalt.err (!%p338_p7)
}
  0x12   :  { %s416_s24 = smov 128   ;;  %s417_s25 = smov 8  }
  0x13   :  { %34 = dma.hbm_to_vmem [thread:$0]  %s512_s1, 512, %s29_s13, [#allocation6], %s416_s24, %s416_s24, %s417_s25  }
  0x14   :  { %s342_s30 = scalar_lea.hbm %s511_s0, 256 }
  0x15   :  { %p343_p8 = scmp.ne.s32.totalorder %s511_s0, %s342_s30  ;;  %p346_p9 = scmp.lt.u32.totalorder %s342_s30, %s511_s0 }
  0x17   :  { %p348_p10 = pnand %p346_p9, %p343_p8 }
  0x19   :  { %351 = shalt.err (!%p348_p10)
}
  0x1a   :  { %s352_s8 = scalar_lea.vmem %s440_s15, 256  ;;  %p357_p12 = scmp.lt.s32.totalorder %s440_s15, %s440_s15 }
  0x1b   :  { %p353_p11 = scmp.ne.s32.totalorder %s440_s15, %s352_s8  ;;  %p358_p13 = scmp.lt.s32.totalorder %s352_s8, %s352_s8 }
  0x1d   :  { %p359_p0 = por %p358_p13, %p357_p12 }
  0x1f   :  { %p360_p1 = pnand %p359_p0, %p353_p11 }
  0x21   :  { %363 = shalt.err (!%p360_p1)
}
  0x22   :  { %22 = dma.hbm_to_vmem [thread:$0]  %s511_s0, 256, %s440_s15, [#allocation3], %s416_s24, %s416_s24, %s417_s25  }
  0x23   :  { %s418_s10 = smov [#allocation7]   ;;  %s364_s14 = scalar_lea.hbm %s513_s2, 512 }
  0x24   :  { %s40_s11 = sshll.u32 %s418_s10, 4  ;;  %p365_p2 = scmp.ne.s32.totalorder %s513_s2, %s364_s14  ;;  %s41_s11 = int_to_ptr.vmem [resolvable:$true] %s40_s11 }
  0x25   :  { %p368_p3 = scmp.lt.u32.totalorder %s364_s14, %s513_s2 }
  0x27   :  { %p370_p4 = pnand %p368_p3, %p365_p2 }
  0x29   :  { %373 = shalt.err (!%p370_p4)
}
  0x2a   :  { %s374_s20 = scalar_lea.vmem %s41_s11, 512  ;;  %p379_p6 = scmp.lt.s32.totalorder %s41_s11, %s41_s11 }
  0x2b   :  { %p375_p5 = scmp.ne.s32.totalorder %s41_s11, %s374_s20  ;;  %p380_p7 = scmp.lt.s32.totalorder %s374_s20, %s374_s20 }
  0x2d   :  { %p381_p8 = por %p380_p7, %p379_p6 }
  0x2f   :  { %p382_p9 = pnand %p381_p8, %p375_p5 }
  0x31   :  { %385 = shalt.err (!%p382_p9)
}
  0x32   :  { %46 = dma.hbm_to_vmem [thread:$0]  %s513_s2, 512, %s41_s11, [#allocation6], %s416_s24, %s416_s24, %s417_s25  }
  0x33   :  { %408 = dma.done.wait [#allocation3], 256  }
  0x34   :  { %409 = vsyncadd [#allocation3], 4294967040 }
  0x35   :  { %410 = dma.done.wait [#allocation6], 1024  }
  0x36   :  { %411 = vsyncadd [#allocation6], 4294966272  ;;  %vm62_vm0 = vcmask 261120   ;;  %v58_v0 = vld [vmem:[#allocation5] sm:$0xff]  ;;  %v59_v1 = vld [vmem:[#allocation5 + $0x8] sm:$0xff]  ;;  %s419_s2 = smov [#allocation8]  }
  0x37   :  { %v60_v2 = vld [vmem:[#allocation5 + $0x10] sm:$0xff]  ;;  %v294_v3 = vpack.c.bf16 %v59_v1, %v58_v0  ;;  %v61_v4 = vld [vmem:[#allocation5 + $0x18] sm:$0xff]  ;;  %v144_v7 = vld [vmem:[#allocation7] sm:$0xff]  ;;  %s243_s21 = sshll.u32 %s419_s2, 4  ;;  %vm235_vm1 = vcmask 523264   ;;  %s244_s21 = int_to_ptr.vmem [resolvable:$true] %s243_s21 }
  0x38   :  { %v56_v5 = vld [vmem:[#allocation2] sm:$0xff]  ;;  %v298_v6 = vpack.c.bf16 %v61_v4, %v60_v2  ;;  %v145_v8 = vld [vmem:[#allocation7 + $0x8] sm:$0xff]  ;;  %v147_v11 = vld [vmem:[#allocation7 + $0x18] sm:$0xff]  ;;  %s386_s22 = scalar_lea.vmem %s244_s21, 256  ;;  %p391_p11 = scmp.lt.s32.totalorder %s244_s21, %s244_s21 }
  0x39   :  { %280 = vmatprep.mubr.msk.f32.mxu0 %vm62_vm0, %v56_v5  ;;  %v146_v9 = vld [vmem:[#allocation7 + $0x10] sm:$0xff]  ;;  %291 = vmatprep.mubr.msk.f32.mxu1 %vm62_vm0, %v56_v5  ;;  %v302_v10 = vpack.c.bf16 %v145_v8, %v144_v7  ;;  %v57_v13 = vld [vmem:[#allocation2 + $0x8] sm:$0xff]  ;;  %p387_p10 = scmp.ne.s32.totalorder %s244_s21, %s386_s22  ;;  %p392_p12 = scmp.lt.s32.totalorder %s386_s22, %s386_s22 }
  0x3a   :  { %295 = vmatprep.subr.bf16.mxu0 %v294_v3  ;;  %v306_v12 = vpack.c.bf16 %v147_v11, %v146_v9 }
  0x3b   :  { %297 = vmatpush3.bf16.msra.mxu0 %v294_v3  ;;  %303 = vmatprep.subr.bf16.mxu1 %v302_v10  ;;  %p393_p13 = por %p392_p12, %p391_p11 }
  0x3c   :  { %299 = vmatprep.subr.bf16.mxu0 %v298_v6  ;;  %305 = vmatpush3.bf16.msra.mxu1 %v302_v10 }
  0x3d   :  { %307 = vmatprep.subr.bf16.mxu1 %v306_v12  ;;  %p394_p0 = pnand %p393_p13, %p387_p10 }
  0x3f   :  { %301 = vmatpush3.bf16.msra.mxu0 %v298_v6 }
  0x40   :  { %309 = vmatpush3.bf16.msra.mxu1 %v306_v12 }
  0x42   :  { %281 = vmatmul.mubr.msk.f32.vlgmr.msra.gmra.mrb[0].mxu0 %vm62_vm0, %v57_v13 }
  0x43   :  { %292 = vmatmul.mubr.msk.f32.vlgmr.msra.gmra.mrb[0].mxu1 %vm62_vm0, %v57_v13 }
 0x115   :  { %v282_v14 = vpop.f32.mrb[0].mxu0 }
 0x116   :  { %v226_v15 = vmul.f32 0.70710677, %v282_v14  ;;  %v135_v16 = vpop.f32.mrb[1].mxu0  ;;  %v293_v18 = vpop.f32.mrb[0].mxu1  ;;  %v224_v22 = vmul.f32 0.5, %v282_v14 }
 0x117   :  { %v225_v17 = vmul.f32 0.70710677, %v135_v16  ;;  %v214_v19 = vpop.f32.mrb[1].mxu1  ;;  %v223_v24 = vmul.f32 0.5, %v135_v16 }
 0x118   :  { %316 = verf.f32 %v226_v15 }
 0x119   :  { %318 = verf.f32 %v225_v17 }
 0x122   :  { %v317_v20 = vpop.eup %316 }
 0x123   :  { %v319_v21 = vpop.eup %318  ;;  %v230_v23 = vadd.f32 1.0, %v317_v20 }
 0x124   :  { %v229_v25 = vadd.f32 1.0, %v319_v21 }
 0x125   :  { %v232_v26 = vmul.f32 %v230_v23, %v224_v22 }
 0x126   :  { %v231_v27 = vmul.f32 %v229_v25, %v223_v24 }
 0x127   :  { %v234_v28 = vmul.f32 %v293_v18, %v232_v26 }
 0x128   :  { %v233_v29 = vmul.f32 %v231_v27, %v214_v19 }
 0x129   :  { %237 = vst.msk [vmem:[#allocation8 + $0x8] sm:$0xff] %vm235_vm1, %v234_v28 }
 0x12a   :  { %236 = vst.msk [vmem:[#allocation8] sm:$0xff] %vm235_vm1, %v233_v29 }
 0x12b   :  { %397 = shalt.err (!%p394_p0)
}
 0x12c   :  { %s398_s27 = scalar_lea.hbm %s514_s3, 256 }
 0x12d   :  { %p399_p1 = scmp.ne.s32.totalorder %s514_s3, %s398_s27  ;;  %p402_p2 = scmp.lt.u32.totalorder %s398_s27, %s514_s3 }
 0x12f   :  { %p404_p3 = pnand %p402_p2, %p399_p1 }
 0x131   :  { %407 = shalt.err (!%p404_p3)
}
 0x132   :  { %249 = dma.vmem_to_hbm [thread:$0]  %s244_s21, 256, %s514_s3, [#allocation4], %s416_s24, %s416_s24, %s417_s25  }
 0x133   :  { %412 = dma.done.wait [#allocation4], 256  }
 0x134   :  { %413 = vsyncadd [#allocation4], 4294967040 }
 0x135   :  { %253 = vsyncpa [#allocation3], 1 }
 0x136   :  { %254 = vsyncpa [#allocation6], 1 }
 0x137   :  { %255 = vsyncpa [#allocation4], 1 }

</bundles_post_ra>
